<compile_context>
chip_gen: v7x
topology: tpu7x:2x2x1
jax: 0.10.0
libtpu: 0.0.40
codegen_flags: <defaults>
</compile_context>

<pallas_src>
import functools

import jax
import jax.numpy as jnp
from jax.experimental import pallas as pl
from jax.experimental.pallas import tpu as pltpu


def _round_up(x, m):
    return ((x + m - 1) // m) * m


def _default_vmem_limit():
    # ~75% of physical VMEM, capped at 96 MiB: ~96 MiB on v5e/v6e, ~48 MiB on v7x.
    try:
        cap = int(pltpu.get_tpu_info().vmem_capacity_bytes)
    except Exception:
        cap = 64 << 20
    return min(cap * 3 // 4, 96 << 20)


def _io_spec(block_shape, index_map, depth=2):
    """BlockSpec with optional deeper multi-buffering (falls back to default 2-deep)."""
    if depth > 2:
        try:
            return pl.BlockSpec(block_shape, index_map,
                                pipeline_mode=pl.Buffered(depth))
        except (AttributeError, TypeError):
            pass
    return pl.BlockSpec(block_shape, index_map)


def _gcn_agg_kernel(adj_ref, y_ref, b_ref, out_ref, acc_ref, *, deg_col):
    """Grid = (dst tiles i, src tiles k).

    Accumulate adj @ Y over k (bf16 MXU, f32 accumulator).  The spare lane `deg_col`
    of Y carries 1.0 for every real source node, so acc[:, deg_col] is the in-degree
    (computed by the same matmul, for free).  Finalize at the last k: exact divide by
    the degree, add bias, ReLU (the NodeApplyModule), store lane-dense.
    """
    k = pl.program_id(1)

    @pl.when(k == 0)
    def _():
        acc_ref[...] = jnp.zeros_like(acc_ref)

    # message passing: partial sum over this src tile (bf16 operands, f32 accumulate)
    acc_ref[...] += jnp.dot(adj_ref[...], y_ref[...],
                            preferred_element_type=jnp.float32)

    @pl.when(k == pl.num_programs(1) - 1)
    def _():
        acc = acc_ref[...]                                   # (tm, f_out_p) f32
        deg = acc[:, deg_col:deg_col + 1]                    # (tm, 1) in-degree, exact
        mean = acc * (1.0 / jnp.maximum(deg, 1.0))           # exact divide, once per tile
        out_ref[...] = jnp.maximum(mean + b_ref[...], 0.0)   # Linear bias + ReLU


@functools.partial(jax.jit, static_argnames=("tm", "tk", "vmem_limit"))
def _gcn_forward_impl(adj, feature, weight, bias, *, tm, tk, vmem_limit):
    n, f_in = feature.shape
    f_out = weight.shape[0]

    # --- zero-in-degree fallback as self-loops (exact: mean -> own feature) ---
    deg0 = (jnp.sum(adj, axis=-1) == 0.0).astype(adj.dtype)
    idx = jnp.arange(n)
    adj = adj.at[idx, idx].add(deg0)

    # --- hoist NodeApplyModule's Linear before aggregation: Y = X @ W^T (f32) ---
    y = jnp.dot(feature.astype(jnp.float32), weight.astype(jnp.float32).T)

    # --- pad: dst rows to tm, src rows to tk (independently), lanes to 128 with one
    #     spare column of ones so the in-degree falls out of the same MXU pass ---
    n_dst = _round_up(n, tm)
    n_src = _round_up(n, tk)
    f_out_p = _round_up(f_out + 1, 128)
    deg_col = f_out

    adj_p = jnp.zeros((n_dst, n_src), jnp.bfloat16).at[:n, :n].set(
        adj.astype(jnp.bfloat16))                          # 0/1 exact in bf16
    y_p = jnp.zeros((n_src, f_out_p), jnp.bfloat16).at[:n, :f_out].set(
        y.astype(jnp.bfloat16))
    y_p = y_p.at[:n, deg_col].set(1.0)                     # ones column -> degree
    b_p = jnp.zeros((1, f_out_p), jnp.float32).at[0, :f_out].set(
        bias.astype(jnp.float32))

    grid = (n_dst // tm, n_src // tk)
    depth = 3 if grid[1] >= 3 else 2                       # deeper pipelining only when useful

    out_p = pl.pallas_call(
        functools.partial(_gcn_agg_kernel, deg_col=deg_col),
        out_shape=jax.ShapeDtypeStruct((n_dst, f_out_p), jnp.float32),
        grid_spec=pltpu.PrefetchScalarGridSpec(
            num_scalar_prefetch=0,
            grid=grid,
            in_specs=[
                _io_spec((tm, tk), lambda i, k: (i, k), depth=depth),       # adj tile (bf16)
                _io_spec((tk, f_out_p), lambda i, k: (k, 0), depth=depth),  # Y tile   (bf16)
                pl.BlockSpec((1, f_out_p), lambda i, k: (0, 0)),            # bias, VMEM-resident
            ],
            out_specs=pl.BlockSpec((tm, f_out_p), lambda i, k: (i, 0)),
            scratch_shapes=[
                pltpu.VMEM((tm, f_out_p), jnp.float32),                     # aggregation acc
            ],
        ),
        compiler_params=pltpu.CompilerParams(
            dimension_semantics=("parallel", "arbitrary"),
            vmem_limit_bytes=vmem_limit,
        ),
    )(adj_p, y_p, b_p)

    return out_p[:n, :f_out]


def gcn_forward(adj, feature, weight, bias, *, tm=None, tk=None):
    """Mean message passing + NodeApplyModule (Linear + ReLU).

    adj: (N, N) dst x src 0/1; feature: (N, F_in); weight: (F_out, F_in); bias: (F_out,).
    """
    n = feature.shape[0]
    n128 = _round_up(n, 128)
    if tm is None:
        tm = min(512, n128)       # dst rows per tile
    if tk is None:
        tk = min(1024, n128)      # src cols per tile
    assert tm % 8 == 0 and tk % 128 == 0, "tm must be /8, tk must be /128"
    return _gcn_forward_impl(adj, feature, weight, bias,
                             tm=tm, tk=tk, vmem_limit=_default_vmem_limit())


def reference_gcn(adj, feature, weight, bias):
    """Exact f32 reference of the layer semantics."""
    agg = adj @ feature
    deg = adj.sum(axis=-1, keepdims=True)
    mean = jnp.where(deg > 0.0, agg / jnp.maximum(deg, 1.0), feature)
    return jnp.maximum(mean @ weight.T + bias, 0.0)


def reference_gcn_matched(adj, feature, weight, bias):
    """Precision-matched reference (hoisted Linear, bf16 aggregation operands, f32 acc)."""
    n = feature.shape[0]
    deg0 = (adj.sum(axis=-1) == 0.0).astype(adj.dtype)
    idx = jnp.arange(n)
    adj_sl = adj.at[idx, idx].add(deg0)                     # self-loops for zero in-degree
    y = jnp.dot(feature.astype(jnp.float32),
                weight.astype(jnp.float32).T).astype(jnp.bfloat16)
    agg = jnp.dot(adj_sl.astype(jnp.bfloat16), y, preferred_element_type=jnp.float32)
    deg = adj_sl.sum(axis=-1, keepdims=True)
    mean = agg / jnp.maximum(deg, 1.0)
    return jnp.maximum(mean + bias, 0.0)


if __name__ == "__main__":
    key = jax.random.PRNGKey(0)
    k_adj, k_feat, k_w, k_b = jax.random.split(key, 4)

    N = 200       # number of nodes in the (batched) graph
    F_IN = 32     # input feature dim
    F_OUT = 32    # output feature dim

    # Deterministic graph: ring edges plus sparse random directed edges.
    ring = jnp.roll(jnp.eye(N, dtype=jnp.float32), shift=1, axis=1)   # edge (v+1 -> v)
    rand_edges = (jax.random.uniform(k_adj, (N, N)) < 0.05).astype(jnp.float32)
    adj = jnp.clip(ring + rand_edges, 0.0, 1.0)                       # (N_dst, N_src)
    # a couple of zero-in-degree nodes to exercise the fallback (self-loop) path
    adj = adj.at[5, :].set(0.0).at[17, :].set(0.0)

    feature = jax.random.normal(k_feat, (N, F_IN), dtype=jnp.float32)

    # nn.Linear(in_feats, out_feats) parameters, deterministic synthetic init.
    bound = 1.0 / (F_IN ** 0.5)
    weight = jax.random.uniform(k_w, (F_OUT, F_IN), minval=-bound, maxval=bound)
    bias = jax.random.uniform(k_b, (F_OUT,), minval=-bound, maxval=bound)

    # Small (128,128) tiles exercise a real 2x2 (dst, src) grid; default tiles are the
    # production MXU/step-overhead-friendly choice (tm=512, tk=1024 clamped to the graph).
    out_tiled = jax.block_until_ready(gcn_forward(adj, feature, weight, bias, tm=128, tk=128))
    out_default = jax.block_until_ready(gcn_forward(adj, feature, weight, bias))

    ref_matched = reference_gcn_matched(adj, feature, weight, bias)
    ref_f32 = reference_gcn(adj, feature, weight, bias)

    for out in (out_tiled, out_default):
        assert out.shape == (N, F_OUT)
        # tight check vs precision-matched reference (only accumulation order differs)
        assert jnp.allclose(out, ref_matched, atol=1e-2, rtol=1e-2), "mismatch vs matched reference"
        # semantic check vs exact f32 reference (slack for bf16 aggregation operands)
        assert jnp.allclose(out, ref_f32, atol=5e-2, rtol=5e-2), "mismatch vs f32 reference"

    print("KERNEL_OK")
</pallas_src>

<mosaic_0001>
module attributes {stable_mosaic.version = 11 : i64} {
  func.func @_gcn_agg_kernel(%arg0: i32, %arg1: i32, %arg2: memref<128x128xbf16, #tpu.memory_space<vmem>>, %arg3: memref<128x128xbf16, #tpu.memory_space<vmem>>, %arg4: memref<1x128xf32, #tpu.memory_space<vmem>>, %arg5: memref<128x128xf32, #tpu.memory_space<vmem>>, %arg6: memref<128x128xf32, #tpu.memory_space<vmem>>) attributes {dimension_semantics = [#tpu.dimension_semantics<parallel>, #tpu.dimension_semantics<arbitrary>], iteration_bounds = array<i64: 2, 2>, scalar_prefetch = 0 : i64, scratch_operands = 1 : i64, tpu.core_type = #tpu.core_type<tc>, window_params = [{transform_indices = @transform_0, window_bounds = array<i64: 128, 128>}, {transform_indices = @transform_1, window_bounds = array<i64: 128, 128>}, {pipeline_mode = #tpu.pipeline_mode<synchronous>, transform_indices = @transform_2, window_bounds = array<i64: 1, 128>}, {transform_indices = @transform_3, window_bounds = array<i64: 128, 128>}]} {
    %c0_i32 = arith.constant 0 : i32
    %0 = arith.cmpi eq, %arg1, %c0_i32 : i32
    %1 = arith.extui %0 : i1 to i32
    %c0_i32_0 = arith.constant 0 : i32
    %2 = arith.cmpi ne, %1, %c0_i32_0 : i32
    scf.if %2 {
      %cst_9 = arith.constant 0.000000e+00 : f32
      %12 = vector.broadcast %cst_9 : f32 to vector<128x128xf32>
      %c0_10 = arith.constant 0 : index
      %c0_11 = arith.constant 0 : index
      %13 = vector.load %arg6[%c0_10, %c0_11] : memref<128x128xf32, #tpu.memory_space<vmem>>, vector<128x128xf32>
      tpu.vector_store %arg6[%c0_10, %c0_11], %12 {strides = array<i32>} : memref<128x128xf32, #tpu.memory_space<vmem>>, vector<128x128xf32>,
    } else {
    }
    %c0 = arith.constant 0 : index
    %c0_1 = arith.constant 0 : index
    %3 = vector.load %arg6[%c0, %c0_1] : memref<128x128xf32, #tpu.memory_space<vmem>>, vector<128x128xf32>
    %c0_2 = arith.constant 0 : index
    %c0_3 = arith.constant 0 : index
    %4 = vector.load %arg2[%c0_2, %c0_3] : memref<128x128xbf16, #tpu.memory_space<vmem>>, vector<128x128xbf16>
    %c0_4 = arith.constant 0 : index
    %c0_5 = arith.constant 0 : index
    %5 = vector.load %arg3[%c0_4, %c0_5] : memref<128x128xbf16, #tpu.memory_space<vmem>>, vector<128x128xbf16>
    %cst = arith.constant dense<0.000000e+00> : vector<128x128xf32>
    %6 = tpu.matmul %4, %5, %cst {dimension_numbers = #tpu.dot_dimension_numbers<[1], [0], [0], [1], [0, 0, 1, 1], [], []>} : vector<128x128xbf16>, vector<128x128xbf16>, vector<128x128xf32> -> vector<128x128xf32>
    %7 = arith.addf %3, %6 : vector<128x128xf32>
    %c0_6 = arith.constant 0 : index
    %c0_7 = arith.constant 0 : index
    %8 = vector.load %arg6[%c0_6, %c0_7] : memref<128x128xf32, #tpu.memory_space<vmem>>, vector<128x128xf32>
    tpu.vector_store %arg6[%c0_6, %c0_7], %7 {strides = array<i32>} : memref<128x128xf32, #tpu.memory_space<vmem>>, vector<128x128xf32>,
    %c1_i32 = arith.constant 1 : i32
    %9 = arith.cmpi eq, %arg1, %c1_i32 : i32
    %10 = arith.extui %9 : i1 to i32
    %c0_i32_8 = arith.constant 0 : i32
    %11 = arith.cmpi ne, %10, %c0_i32_8 : i32
    scf.if %11 {
      %c0_9 = arith.constant 0 : index
      %c0_10 = arith.constant 0 : index
      %12 = vector.load %arg6[%c0_9, %c0_10] : memref<128x128xf32, #tpu.memory_space<vmem>>, vector<128x128xf32>
      %13 = vector.extract_strided_slice %12 {offsets = [0, 32], sizes = [128, 1], strides = [1, 1]} : vector<128x128xf32> to vector<128x1xf32>
      %cst_11 = arith.constant 1.000000e+00 : f32
      %14 = vector.broadcast %cst_11 : f32 to vector<128x1xf32>
      %15 = arith.maximumf %13, %14 : vector<128x1xf32>
      %cst_12 = arith.constant 1.000000e+00 : f32
      %16 = vector.broadcast %cst_12 : f32 to vector<128x1xf32>
      %17 = arith.divf %16, %15 : vector<128x1xf32>
      %18 = vector.broadcast %17 : vector<128x1xf32> to vector<128x128xf32>
      %19 = arith.mulf %12, %18 : vector<128x128xf32>
      %c0_13 = arith.constant 0 : index
      %c0_14 = arith.constant 0 : index
      %20 = vector.load %arg4[%c0_13, %c0_14] : memref<1x128xf32, #tpu.memory_space<vmem>>, vector<1x128xf32>
      %21 = vector.broadcast %20 : vector<1x128xf32> to vector<128x128xf32>
      %22 = arith.addf %19, %21 : vector<128x128xf32>
      %cst_15 = arith.constant 0.000000e+00 : f32
      %23 = vector.broadcast %cst_15 : f32 to vector<128x128xf32>
      %24 = arith.maximumf %22, %23 : vector<128x128xf32>
      %c0_16 = arith.constant 0 : index
      %c0_17 = arith.constant 0 : index
      %25 = vector.load %arg5[%c0_16, %c0_17] : memref<128x128xf32, #tpu.memory_space<vmem>>, vector<128x128xf32>
      tpu.vector_store %arg5[%c0_16, %c0_17], %24 {strides = array<i32>} : memref<128x128xf32, #tpu.memory_space<vmem>>, vector<128x128xf32>,
    } else {
    }
    return
  }
  func.func @transform_0(%arg0: i32, %arg1: i32) -> (i32, i32) {
    %c0_i32 = arith.constant 0 : i32
    return %arg0, %arg1 : i32, i32
  }
  func.func @transform_1(%arg0: i32, %arg1: i32) -> (i32, i32) {
    %c0_i32 = arith.constant 0 : i32
    %c0_i32_0 = arith.constant 0 : i32
    return %arg1, %c0_i32 : i32, i32
  }
  func.func @transform_2(%arg0: i32, %arg1: i32) -> (i32, i32) {
    %c0_i32 = arith.constant 0 : i32
    %c0_i32_0 = arith.constant 0 : i32
    %c0_i32_1 = arith.constant 0 : i32
    return %c0_i32, %c0_i32_0 : i32, i32
  }
  func.func @transform_3(%arg0: i32, %arg1: i32) -> (i32, i32) {
    %c0_i32 = arith.constant 0 : i32
    %c0_i32_0 = arith.constant 0 : i32
    return %arg0, %c0_i32 : i32, i32
  }
}

</mosaic_0001>

<bundles_post_ra>
// kernel: _gcn_forward_impl.1
= control target key start
LH: loop header
LB: loop body
LE: loop exit
PB: predicated region body
PF: predicated region fallthrough
CT: control target
= control target key end

     0   :  { %s1200_s12 = smov 0   ;;  %s1202_s13 = smov 0   ;;  %s1435_s0 = inlined_call_operand.vmem [shape: bf16[256,256], index: 0, kind: input, shape index: {}]   ;;  %s1436_s1 = inlined_call_operand.vmem [shape: bf16[256,128], index: 1, kind: input, shape index: {}]   ;;  %s1437_s2 = inlined_call_operand.vmem [shape: f32[1,128], index: 2, kind: input, shape index: {}]   ;;  %s1438_s3 = inlined_call_operand.vmem [shape: f32[256,128], index: 3, kind: output, shape index: {}]  }
   0x1   :  { %s1204_s14 = smov 0   ;;  %s1206_s15 = smov 0  }
   0x2   :  { %s1208_s16 = smov 0   ;;  %s1210_s17 = smov 0  }
   0x3   :  { %s1212_s18 = smov 0  }
   0x4 LB: > { %s22_s19 = sadd.s32 1, %s1168_s16  ;;  %s25_s20 = sadd.s32 1, %s1172_s17  ;;  %s1176_s18 = sphi %s1212_s18, %s13_s18   ;;  %s1172_s17 = sphi %s1210_s17, %s1444_s17   ;;  %s1168_s16 = sphi %s1208_s16, %s1443_s16   ;;  %s1164_s15 = sphi %s1206_s15, %s1442_s15   ;;  %s1160_s14 = sphi %s1204_s14, %s1441_s14   ;;  %s1156_s13 = sphi %s1202_s13, %s1440_s13   ;;  %s1152_s12 = sphi %s1200_s12, %s1439_s12  }
   0x5   : > { %p23_p0 = scmp.ge.s32.totalorder %s22_s19, 2  ;;  %p41_p1 = scmp.ne.s32.totalorder %s1156_s13, %s1152_s12 }
   0x6   : > { %p42_p2 = scmp.eq.s32.totalorder %s1176_s18, 0  ;;  %s34_s24 = sadd.s32 1, %s1156_s13 }
   0x7   : > { %s1446_s19 = smov (%p23_p0, %s22_s19), 0  ;;  %s1448_s20 = smov (!%p23_p0, %s25_s20), %s1172_s17 }
   0x8   : > { %p43_p3 = por %p42_p2, %p41_p1  ;;  %p27_p4 = scmp.ge.s32.totalorder %s1448_s20, 2 }
   0x9   : > { %s30_s21 = ssub.s32 %s1168_s16, %s1446_s19  ;;  %p917_p6 = scmp.ge.s32.totalorder %s1176_s18, 4 }
   0xa   : > { %s1450_s20 = smov (%p27_p4, %s1448_s20), 0 }
   0xb   : > { %s29_s22 = ssub.s32 %s1172_s17, %s1450_s20  ;;  %143 = sbr.rel (%p917_p6) target bundleno = 34 (0x22), region = 20 }
   0xc   : > { %s31_s23 = sor.u32 %s30_s21, %s29_s22 }
   0xd   : > { %p32_p5 = scmp.eq.s32.totalorder %s31_s23, 0 }
   0xf   : > { %s1251_s25 = scalar_select %p32_p5, %s1156_s13, %s34_s24  }
  0x12   : > { %146 = sbr.rel (!%p43_p3) target bundleno = 34 (0x22), region = 24  ;;  %s148_s26 = sand.u32 (%p43_p3), 1, %s1156_s13  }
  0x13   : > { %s949_s27 = sshll.u32 (%p43_p3), %s1172_s17, 5  ;;  %s918_s28 = sshll.u32 (%p43_p3), %s148_s26, 6 }
  0x14   : > { %s153_s29 = sadd.s32 (%p43_p3), %s1168_s16, %s949_s27  ;;  %s150_s7 = scalar_lea.vmem (%p43_p3), [#allocation3], %s918_s28 }
  0x15   : > { %s921_s30 = sshll.u32 (%p43_p3), %s153_s29, 2 }
  0x16   : > { %s1260_s6 = scalar_lea.vmem (%p43_p3), %s1435_s0, %s921_s30 }
  0x17   : > { %v171_v0 = vld [vmem:[%s1260_s6] sm:$0xf] (%p43_p3)  ;;  %v173_v1 = vld [vmem:[%s1260_s6 + $0x8] sm:$0xf] (%p43_p3)  ;;  %v175_v2 = vld [vmem:[%s1260_s6 + $0x10] sm:$0xf] (%p43_p3) }
  0x18   : > { %172 = vst [vmem:[%s150_s7] sm:$0xf] (%p43_p3), %v171_v0  ;;  %174 = vst [vmem:[%s150_s7 + $0x4] sm:$0xf] (%p43_p3), %v173_v1  ;;  %v177_v3 = vld [vmem:[%s1260_s6 + $0x18] sm:$0xf] (%p43_p3) }
  0x19   : > { %176 = vst [vmem:[%s150_s7 + $0x8] sm:$0xf] %v175_v2  ;;  %v179_v4 = vld [vmem:[%s1260_s6 + $0x20] sm:$0xf]  ;;  %v181_v5 = vld [vmem:[%s1260_s6 + $0x28] sm:$0xf] }
  0x1a   : > { %178 = vst [vmem:[%s150_s7 + $0xc] sm:$0xf] %v177_v3  ;;  %180 = vst [vmem:[%s150_s7 + $0x10] sm:$0xf] %v179_v4  ;;  %v183_v6 = vld [vmem:[%s1260_s6 + $0x30] sm:$0xf] }
  0x1b   : > { %182 = vst [vmem:[%s150_s7 + $0x14] sm:$0xf] %v181_v5  ;;  %v185_v7 = vld [vmem:[%s1260_s6 + $0x38] sm:$0xf]  ;;  %v187_v8 = vld [vmem:[%s1260_s6 + $0x40] sm:$0xf] }
  0x1c   : > { %184 = vst [vmem:[%s150_s7 + $0x18] sm:$0xf] %v183_v6  ;;  %186 = vst [vmem:[%s150_s7 + $0x1c] sm:$0xf] %v185_v7  ;;  %v189_v9 = vld [vmem:[%s1260_s6 + $0x48] sm:$0xf] }
  0x1d   : > { %188 = vst [vmem:[%s150_s7 + $0x20] sm:$0xf] %v187_v8  ;;  %v191_v10 = vld [vmem:[%s1260_s6 + $0x50] sm:$0xf]  ;;  %v193_v11 = vld [vmem:[%s1260_s6 + $0x58] sm:$0xf] }
  0x1e   : > { %190 = vst [vmem:[%s150_s7 + $0x24] sm:$0xf] %v189_v9  ;;  %192 = vst [vmem:[%s150_s7 + $0x28] sm:$0xf] %v191_v10  ;;  %v195_v12 = vld [vmem:[%s1260_s6 + $0x60] sm:$0xf] }
  0x1f   : > { %194 = vst [vmem:[%s150_s7 + $0x2c] sm:$0xf] %v193_v11  ;;  %v197_v13 = vld [vmem:[%s1260_s6 + $0x68] sm:$0xf]  ;;  %v199_v14 = vld [vmem:[%s1260_s6 + $0x70] sm:$0xf] }
  0x20   : > { %196 = vst [vmem:[%s150_s7 + $0x30] sm:$0xf] %v195_v12  ;;  %198 = vst [vmem:[%s150_s7 + $0x34] sm:$0xf] %v197_v13  ;;  %v201_v15 = vld [vmem:[%s1260_s6 + $0x78] sm:$0xf] }
  0x21   : > { %200 = vst [vmem:[%s150_s7 + $0x38] sm:$0xf] %v199_v14  ;;  %202 = vst [vmem:[%s150_s7 + $0x3c] sm:$0xf] %v201_v15 }
  0x22 PF: > { %p922_p7 = scmp.ge.s32.totalorder %s1176_s18, 1  ;;  %p265_p8 = scmp.lt.s32.totalorder %s1176_s18, 5 }
  0x24   : > { %p266_p9 = pnand %p922_p7, %p265_p8 }
  0x25   : > { %s272_s8 = sand.u32 (!%p266_p9), 1, %s1152_s12   ;;  %s924_s9 = sshll.u32 (!%p266_p9), %s1160_s14, 4 }
  0x26   : > { %269 = sbr.rel (%p266_p9) target bundleno = 490 (0x1ea), region = 69  ;;  %s923_s10 = sshll.u32 (!%p266_p9), %s272_s8, 6 }
  0x27   : > { %p302_p10 = scmp.lt.s32.totalorder (!%p266_p9), %s924_s9, 31  ;;  %s926_s11 = sshll.u32 (!%p266_p9), %s1164_s15, 4 }
  0x28   : > { %p308_p11 = scmp.lt.s32.totalorder (!%p266_p9), %s926_s11, 31  ;;  %s1293_s12 = scalar_lea.vmem (!%p266_p9), [#allocation3], %s923_s10 }
  0x29   : > { %p928_p12 = scmp.ne.s32.totalorder (!%p266_p9), %s1160_s14, 0 }
  0x2d   : > { %s1452_s9 = smov (!%p302_p10, %s924_s9), 31  ;;  %s1454_s11 = smov (!%p308_p11, %s926_s11), 31 }
  0x2e   : > { %s925_s21 = sshll.u32 %s1452_s9, 2  ;;  %s927_s26 = sshll.u32 %s1454_s11, 3  ;;  %v1178_v16 = vmov (!%p928_p12), 0.0  }
  0x2f   : > { %s1286_s24 = scalar_lea.vmem %s1436_s1, %s925_s21  ;;  %s1291_s29 = scalar_lea.vmem %s1438_s3, %s927_s26  ;;  %318 = vst [vmem:[#allocation2] sm:$0xff] (!%p928_p12), %v1178_v16  ;;  %319 = vst [vmem:[#allocation2 + $0x8] sm:$0xff] (!%p928_p12), %v1178_v16 }
  0x30   : > { %317 = sbr.rel (%p928_p12) target bundleno = 55 (0x37), region = 77  ;;  %320 = vst [vmem:[#allocation2 + $0x10] sm:$0xff] (!%p928_p12), %v1178_v16  ;;  %321 = vst [vmem:[#allocation2 + $0x18] sm:$0xff] (!%p928_p12), %v1178_v16 }
  0x31   : > { %322 = vst [vmem:[#allocation2 + $0x20] sm:$0xff] (!%p928_p12), %v1178_v16  ;;  %323 = vst [vmem:[#allocation2 + $0x28] sm:$0xff] (!%p928_p12), %v1178_v16 }
  0x32   : > { %324 = vst [vmem:[#allocation2 + $0x30] sm:$0xff] (!%p928_p12), %v1178_v16  ;;  %325 = vst [vmem:[#allocation2 + $0x38] sm:$0xff] (!%p928_p12), %v1178_v16 }
  0x33   : > { %326 = vst [vmem:[#allocation2 + $0x40] sm:$0xff] (!%p928_p12), %v1178_v16  ;;  %327 = vst [vmem:[#allocation2 + $0x48] sm:$0xff] (!%p928_p12), %v1178_v16 }
  0x34   : > { %328 = vst [vmem:[#allocation2 + $0x50] sm:$0xff] (!%p928_p12), %v1178_v16  ;;  %329 = vst [vmem:[#allocation2 + $0x58] sm:$0xff] (!%p928_p12), %v1178_v16 }
  0x35   : > { %330 = vst [vmem:[#allocation2 + $0x60] sm:$0xff] (!%p928_p12), %v1178_v16  ;;  %331 = vst [vmem:[#allocation2 + $0x68] sm:$0xff] (!%p928_p12), %v1178_v16 }
  0x36   : > { %332 = vst [vmem:[#allocation2 + $0x70] sm:$0xff] (!%p928_p12), %v1178_v16  ;;  %333 = vst [vmem:[#allocation2 + $0x78] sm:$0xff] (!%p928_p12), %v1178_v16 }
  0x37 PF: > { %v1072_v17 = vld [vmem:[%s1286_s24] sm:$0xff]   ;;  %v1073_v18 = vld [vmem:[%s1286_s24 + $0x8] sm:$0xff]   ;;  %v1074_v19 = vld [vmem:[%s1286_s24 + $0x10] sm:$0xff]   ;;  %p945_p13 = scmp.ne.s32.totalorder %s1160_s14, 1 }
  0x38   : > { %966 = vmatprep.subr.bf16.mxu0 %v1072_v17  ;;  %998 = vmatprep.subr.bf16.mxu1 %v1072_v17  ;;  %v1075_v20 = vld [vmem:[%s1286_s24 + $0x18] sm:$0xff]   ;;  %v1080_v21 = vld [vmem:[%s1293_s12] sm:$0xff]   ;;  %v1077_v24 = vld [vmem:[%s1286_s24 + $0x28] sm:$0xff]  }
  0x39   : > { %967 = vmatpush3.bf16.msra.mxu0 %v1072_v17  ;;  %1006 = vmatpush3.bf16.msra.mxu1 %v1072_v17  ;;  %v1081_v22 = vld [vmem:[%s1293_s12 + $0x20] sm:$0xff]   ;;  %v1078_v25 = vld [vmem:[%s1286_s24 + $0x30] sm:$0xff]   ;;  %v1079_v26 = vld [vmem:[%s1286_s24 + $0x38] sm:$0xff]  }
  0x3a   : > { %968 = vmatprep.subr.bf16.mxu0 %v1073_v18  ;;  %999 = vmatprep.subr.bf16.mxu1 %v1073_v18  ;;  %v1076_v23 = vld [vmem:[%s1286_s24 + $0x20] sm:$0xff]   ;;  %v1082_v27 = vld [vmem:[%s1293_s12 + $0x8] sm:$0xff]   ;;  %v1084_v29 = vld [vmem:[%s1293_s12 + $0x10] sm:$0xff]  }
  0x3b   : > { %982 = vmatprep.mubr.bf16.mxu0 %v1080_v21  ;;  %990 = vmatprep.mubr.bf16.mxu1 %v1081_v22  ;;  %v1083_v28 = vld [vmem:[%s1293_s12 + $0x28] sm:$0xff]   ;;  %v1085_v30 = vld [vmem:[%s1293_s12 + $0x30] sm:$0xff]   ;;  %v1086_v31 = vld [vmem:[%s1293_s12 + $0x18] sm:$0xff]  }
  0x3c   : > { %v1087_v32 = vld [vmem:[%s1293_s12 + $0x38] sm:$0xff]   ;;  %v336_v33 = vld [vmem:[#allocation2 + $0x10] sm:$0xff]  ;;  %v334_v35 = vld [vmem:[#allocation2] sm:$0xff] }
  0x3d   : > { %969 = vmatpush3.bf16.msra.mxu0 %v1073_v18  ;;  %1007 = vmatpush3.bf16.msra.mxu1 %v1073_v18  ;;  %v344_v34 = vld [vmem:[#allocation2 + $0x50] sm:$0xff]  ;;  %v342_v36 = vld [vmem:[#allocation2 + $0x40] sm:$0xff]  ;;  %v337_v39 = vld [vmem:[#allocation2 + $0x18] sm:$0xff] }
  0x3e   : > { %970 = vmatprep.subr.bf16.mxu0 %v1074_v19  ;;  %1000 = vmatprep.subr.bf16.mxu1 %v1074_v19  ;;  %v345_v40 = vld [vmem:[#allocation2 + $0x58] sm:$0xff]  ;;  %v335_v45 = vld [vmem:[#allocation2 + $0x8] sm:$0xff]  ;;  %v340_v57 = vld [vmem:[#allocation2 + $0x30] sm:$0xff] }
  0x3f   : > { %v343_v46 = vld [vmem:[#allocation2 + $0x48] sm:$0xff]  ;;  %v348_v58 = vld [vmem:[#allocation2 + $0x70] sm:$0xff]  ;;  %v338_v59 = vld [vmem:[#allocation2 + $0x20] sm:$0xff] }
  0x40   : > { %v346_v60 = vld [vmem:[#allocation2 + $0x60] sm:$0xff]  ;;  %v341_v63 = vld [vmem:[#allocation2 + $0x38] sm:$0xff]  ;;  %v339_v5 = vld [vmem:[#allocation2 + $0x28] sm:$0xff] }
  0x41   : > { %971 = vmatpush3.bf16.msra.mxu0 %v1074_v19  ;;  %1008 = vmatpush3.bf16.msra.mxu1 %v1074_v19  ;;  %v349_v0 = vld [vmem:[#allocation2 + $0x78] sm:$0xff]  ;;  %v347_v6 = vld [vmem:[#allocation2 + $0x68] sm:$0xff] }
  0x42   : > { %972 = vmatprep.subr.bf16.mxu0 %v1075_v20  ;;  %1001 = vmatprep.subr.bf16.mxu1 %v1075_v20 }
  0x45   : > { %973 = vmatpush3.bf16.msra.mxu0 %v1075_v20  ;;  %1009 = vmatpush3.bf16.msra.mxu1 %v1075_v20  ;;  %v1179_v20 = vmov (!%p945_p13), 32  }
  0x46   : > { %974 = vmatprep.subr.bf16.mxu0 %v1076_v23  ;;  %1002 = vmatprep.subr.bf16.mxu1 %v1076_v23 }
  0x47   : > { %1089 = vset.pattern.permute.xlu1 (!%p945_p13), %v1179_v20  ;;  %1088 = vset.pattern.permute.xlu0 (!%p945_p13), %v1179_v20 }
  0x49   : > { %975 = vmatpush3.bf16.msra.mxu0 %v1076_v23  ;;  %1010 = vmatpush3.bf16.msra.mxu1 %v1076_v23 }
  0x4a   : > { %976 = vmatprep.subr.bf16.mxu0 %v1077_v24  ;;  %1003 = vmatprep.subr.bf16.mxu1 %v1077_v24 }
  0x4d   : > { %977 = vmatpush3.bf16.msra.mxu0 %v1077_v24  ;;  %1011 = vmatpush3.bf16.msra.mxu1 %v1077_v24 }
  0x4e   : > { %978 = vmatprep.subr.bf16.mxu0 %v1078_v25  ;;  %1004 = vmatprep.subr.bf16.mxu1 %v1078_v25 }
  0x51   : > { %979 = vmatpush3.bf16.msra.mxu0 %v1078_v25  ;;  %1012 = vmatpush3.bf16.msra.mxu1 %v1078_v25 }
  0x52   : > { %980 = vmatprep.subr.bf16.mxu0 %v1079_v26  ;;  %1005 = vmatprep.subr.bf16.mxu1 %v1079_v26 }
  0x55   : > { %981 = vmatpush3.bf16.msra.mxu0 %v1079_v26  ;;  %1013 = vmatpush3.bf16.msra.mxu1 %v1079_v26 }
  0x58   : > { %983 = vmatmul.mubr.bf16.vlgmr.msra.gmra.mrb[0].mxu0 %v1082_v27  ;;  %991 = vmatmul.mubr.bf16.vlgmr.msra.gmra.mrb[0].mxu1 %v1083_v28 }
  0x59   : > { %986 = vmatprep.mubr.bf16.mxu0 %v1084_v29  ;;  %994 = vmatprep.mubr.bf16.mxu1 %v1085_v30 }
  0x60   : > { %987 = vmatmul.mubr.bf16.gmra.mrb[4].mxu0 %v1086_v31  ;;  %995 = vmatmul.mubr.bf16.gmra.mrb[4].mxu1 %v1087_v32 }
 0x12b   : > { %v984_v37 = vpop.f32.mrb[0].mxu0  ;;  %v992_v38 = vpop.f32.mrb[0].mxu1 }
 0x12c   : > { %v577_v41 = vadd.f32 %v984_v37, %v336_v33  ;;  %v585_v42 = vadd.f32 %v992_v38, %v344_v34  ;;  %v512_v43 = vpop.f32.mrb[1].mxu0  ;;  %v544_v44 = vpop.f32.mrb[1].mxu1 }
 0x12d   : > { %v575_v47 = vadd.f32 %v512_v43, %v334_v35  ;;  %v583_v48 = vadd.f32 %v544_v44, %v342_v36  ;;  %v985_v49 = vpop.f32.mrb[2].mxu0  ;;  %v993_v50 = vpop.f32.mrb[2].mxu1 }
 0x12e   : > { %593 = vst [vmem:[#allocation2 + $0x10] sm:$0xff] %v577_v41  ;;  %601 = vst [vmem:[#allocation2 + $0x50] sm:$0xff] %v585_v42  ;;  %v578_v51 = vadd.f32 %v985_v49, %v337_v39  ;;  %v586_v52 = vadd.f32 %v993_v50, %v345_v40  ;;  %v515_v53 = vpop.f32.mrb[3].mxu0  ;;  %v547_v54 = vpop.f32.mrb[3].mxu1 }
 0x12f   : > { %591 = vst [vmem:[#allocation2] sm:$0xff] %v575_v47  ;;  %599 = vst [vmem:[#allocation2 + $0x40] sm:$0xff] %v583_v48  ;;  %v576_v55 = vadd.f32 %v515_v53, %v335_v45  ;;  %v584_v56 = vadd.f32 %v547_v54, %v343_v46 }
 0x130   : > { %594 = vst [vmem:[#allocation2 + $0x18] sm:$0xff] %v578_v51  ;;  %602 = vst [vmem:[#allocation2 + $0x58] sm:$0xff] %v586_v52 }
 0x131   : > { %592 = vst [vmem:[#allocation2 + $0x8] sm:$0xff] %v576_v55  ;;  %600 = vst [vmem:[#allocation2 + $0x48] sm:$0xff] %v584_v56 }
 0x133   : > { %v988_v61 = vpop.f32.mrb[4].mxu0  ;;  %v996_v62 = vpop.f32.mrb[4].mxu1  ;;  %610 = sbr.rel (%p945_p13) target bundleno = 490 (0x1ea), region = 81 }
 0x134   : > { %v581_v1 = vadd.f32 %v988_v61, %v340_v57  ;;  %v589_v2 = vadd.f32 %v996_v62, %v348_v58  ;;  %v528_v3 = vpop.f32.mrb[5].mxu0  ;;  %v560_v4 = vpop.f32.mrb[5].mxu1 }
 0x135   : > { %v579_v7 = vadd.f32 %v528_v3, %v338_v59  ;;  %v587_v8 = vadd.f32 %v560_v4, %v346_v60  ;;  %v989_v9 = vpop.f32.mrb[6].mxu0  ;;  %v997_v10 = vpop.f32.mrb[6].mxu1  ;;  %v1313_v17 = vld [vmem:[#allocation2 + $0x10] sm:$0xff] (!%p945_p13) }
 0x136   : > { %597 = vst [vmem:[#allocation2 + $0x30] sm:$0xff] %v581_v1  ;;  %605 = vst [vmem:[#allocation2 + $0x70] sm:$0xff] %v589_v2  ;;  %v582_v11 = vadd.f32 %v989_v9, %v341_v63  ;;  %v590_v12 = vadd.f32 %v997_v10, %v349_v0  ;;  %v531_v13 = vpop.f32.mrb[7].mxu0  ;;  %v563_v14 = vpop.f32.mrb[7].mxu1  ;;  %v1315_v18 = vld [vmem:[#allocation2] sm:$0xff] (!%p945_p13)  ;;  %v629_v21 = vmax.f32 (!%p945_p13), %v1313_v17, 1.0 }
 0x137   : > { %595 = vst [vmem:[#allocation2 + $0x20] sm:$0xff] %v579_v7  ;;  %603 = vst [vmem:[#allocation2 + $0x60] sm:$0xff] %v587_v8  ;;  %v580_v15 = vadd.f32 %v531_v13, %v339_v5  ;;  %v588_v16 = vadd.f32 %v563_v14, %v347_v6  ;;  %v1317_v19 = vld [vmem:[#allocation2 + $0x18] sm:$0xff] (!%p945_p13)  ;;  %v627_v22 = vmax.f32 (!%p945_p13), %v1315_v18, 1.0  ;;  %v1339_v35 = vld [vmem:[#allocation2 + $0x40] sm:$0xff] (!%p945_p13) }
 0x138   : > { %598 = vst [vmem:[#allocation2 + $0x38] sm:$0xff] %v582_v11  ;;  %606 = vst [vmem:[#allocation2 + $0x78] sm:$0xff] %v590_v12  ;;  %v630_v23 = vmax.f32 (!%p945_p13), %v1317_v19, 1.0  ;;  %v1322_v24 = vld [vmem:[#allocation2 + $0x8] sm:$0xff] (!%p945_p13)  ;;  %1090 = vrcp.f32 (!%p945_p13), %v629_v21  ;;  %v635_v39 = vmax.f32 (!%p945_p13), %v1339_v35, 1.0  ;;  %v1343_v40 = vld [vmem:[#allocation2 + $0x58] sm:$0xff] (!%p945_p13) }
 0x139   : > { %596 = vst [vmem:[#allocation2 + $0x28] sm:$0xff] %v580_v15  ;;  %604 = vst [vmem:[#allocation2 + $0x68] sm:$0xff] %v588_v16  ;;  %v628_v25 = vmax.f32 (!%p945_p13), %v1322_v24, 1.0  ;;  %1092 = vrcp.f32 (!%p945_p13), %v627_v22  ;;  %v1337_v34 = vld [vmem:[#allocation2 + $0x48] sm:$0xff] (!%p945_p13)  ;;  %v1345_v42 = vld [vmem:[#allocation2 + $0x50] sm:$0xff] (!%p945_p13)  ;;  %v638_v44 = vmax.f32 (!%p945_p13), %v1343_v40, 1.0 }
 0x13a   : > { %1094 = vrcp.f32 %v630_v23  ;;  %v636_v37 = vmax.f32 %v1337_v34, 1.0  ;;  %v637_v45 = vmax.f32 %v1345_v42, 1.0  ;;  %v1364_v2 = vld [vmem:[%s1437_s2] ss:$0 sm:$0xff] }
 0x13b   : > { %1096 = vrcp.f32 %v628_v25 }
 0x13d   : > { %v1333_v31 = vld [vmem:[#allocation2 + $0x30] sm:$0xff] }
 0x13e   : > { %v1327_v27 = vld [vmem:[#allocation2 + $0x20] sm:$0xff]  ;;  %v633_v33 = vmax.f32 %v1333_v31, 1.0  ;;  %v1357_v54 = vld [vmem:[#allocation2 + $0x70] sm:$0xff] }
 0x13f   : > { %v631_v29 = vmax.f32 %v1327_v27, 1.0  ;;  %v1331_v30 = vld [vmem:[#allocation2 + $0x38] sm:$0xff]  ;;  %v1351_v48 = vld [vmem:[#allocation2 + $0x60] sm:$0xff]  ;;  %v641_v57 = vmax.f32 %v1357_v54, 1.0 }
 0x140   : > { %v1325_v26 = vld [vmem:[#allocation2 + $0x28] sm:$0xff]  ;;  %v634_v32 = vmax.f32 %v1331_v30, 1.0  ;;  %v639_v51 = vmax.f32 %v1351_v48, 1.0  ;;  %v1355_v52 = vld [vmem:[#allocation2 + $0x78] sm:$0xff] }
 0x141   : > { %v632_v28 = vmax.f32 %v1325_v26, 1.0  ;;  %v1349_v46 = vld [vmem:[#allocation2 + $0x68] sm:$0xff]  ;;  %v642_v56 = vmax.f32 %v1355_v52, 1.0 }
 0x142   : > { %v1091_v36 = vpop.eup %1090  ;;  %v640_v50 = vmax.f32 %v1349_v46, 1.0 }
 0x143   : > { %1098 = vrcp.f32 %v632_v28  ;;  %v1093_v38 = vpop.eup %1092  ;;  %687 = vperm.xlu1 %1089, %v1091_v36  }
 0x144   : > { %1100 = vrcp.f32 %v631_v29  ;;  %v1095_v41 = vpop.eup %1094  ;;  %677 = vperm.xlu0 %1088, %v1093_v38  }
 0x145   : > { %1102 = vrcp.f32 %v634_v32  ;;  %v1097_v43 = vpop.eup %1096 }
 0x146   : > { %1104 = vrcp.f32 %v633_v33 }
 0x147   : > { %1106 = vrcp.f32 %v636_v37  ;;  %692 = vperm.xlu1 %1089, %v1095_v41  }
 0x148   : > { %1108 = vrcp.f32 %v635_v39  ;;  %682 = vperm.xlu0 %1088, %v1097_v43  }
 0x149   : > { %1110 = vrcp.f32 %v638_v44 }
 0x14a   : > { %1112 = vrcp.f32 %v637_v45 }
 0x14b   : > { %1114 = vrcp.f32 %v640_v50 }
 0x14c   : > { %1116 = vrcp.f32 %v639_v51 }
 0x14d   : > { %v1099_v47 = vpop.eup %1098  ;;  %1118 = vrcp.f32 %v642_v56 }
 0x14e   : > { %v1101_v49 = vpop.eup %1100  ;;  %702 = vperm.xlu1 %1089, %v1099_v47   ;;  %1120 = vrcp.f32 %v641_v57 }
 0x14f   : > { %v1103_v53 = vpop.eup %1102  ;;  %697 = vperm.xlu0 %1088, %v1101_v49  }
 0x150   : > { %v1105_v55 = vpop.eup %1104 }
 0x151   : > { %v1107_v58 = vpop.eup %1106 }
 0x152   : > { %712 = vperm.xlu1 %1089, %v1103_v53   ;;  %v1109_v59 = vpop.eup %1108 }
 0x153   : > { %707 = vperm.xlu0 %1088, %v1105_v55   ;;  %v1111_v60 = vpop.eup %1110 }
 0x154   : > { %v1113_v61 = vpop.eup %1112 }
 0x155   : > { %v1115_v62 = vpop.eup %1114 }
 0x156   : > { %722 = vperm.xlu1 %1089, %v1107_v58   ;;  %v1117_v63 = vpop.eup %1116 }
 0x157   : > { %717 = vperm.xlu0 %1088, %v1109_v59   ;;  %v1119_v0 = vpop.eup %1118 }
 0x158   : > { %v1121_v1 = vpop.eup %1120 }
 0x15a   : > { %732 = vperm.xlu1 %1089, %v1111_v60  }
 0x15b   : > { %727 = vperm.xlu0 %1088, %v1113_v61  }
 0x15e   : > { %742 = vperm.xlu1 %1089, %v1115_v62  }
 0x15f   : > { %737 = vperm.xlu0 %1088, %v1117_v63  }
 0x162   : > { %752 = vperm.xlu1 %1089, %v1119_v0  }
 0x163   : > { %747 = vperm.xlu0 %1088, %v1121_v1  }
 0x1c2   : > { %v688_v3 = vpop.permute.xlu1 %687 }
 0x1c3   : > { %v757_v4 = vmul.f32 %v688_v3, %v1313_v17  ;;  %v678_v5 = vpop.permute.xlu0 %677 }
 0x1c4   : > { %v755_v6 = vmul.f32 %v678_v5, %v1315_v18 }
 0x1c5   : > { %v780_v7 = vadd.f32 %v1364_v2, %v757_v4 }
 0x1c6   : > { %v778_v8 = vadd.f32 %v1364_v2, %v755_v6  ;;  %v693_v9 = vpop.permute.xlu1 %692 }
 0x1c7   : > { %v796_v10 = vmax.f32 %v780_v7, 0.0  ;;  %v758_v11 = vmul.f32 %v693_v9, %v1317_v19  ;;  %v683_v12 = vpop.permute.xlu0 %682 }
 0x1c8   : > { %v794_v13 = vmax.f32 %v778_v8, 0.0  ;;  %v756_v14 = vmul.f32 %v683_v12, %v1322_v24 }
 0x1c9   : > { %812 = vst [vmem:[%s1291_s29 + $0x10] sm:$0xff] %v796_v10  ;;  %v781_v15 = vadd.f32 %v1364_v2, %v758_v11 }
 0x1ca   : > { %810 = vst [vmem:[%s1291_s29] sm:$0xff] %v794_v13  ;;  %v779_v16 = vadd.f32 %v1364_v2, %v756_v14 }
 0x1cb   : > { %v797_v18 = vmax.f32 %v781_v15, 0.0 }
 0x1cc   : > { %v795_v22 = vmax.f32 %v779_v16, 0.0 }
 0x1cd   : > { %v703_v17 = vpop.permute.xlu1 %702  ;;  %813 = vst [vmem:[%s1291_s29 + $0x18] sm:$0xff] %v797_v18 }
 0x1ce   : > { %v760_v20 = vmul.f32 %v703_v17, %v1325_v26  ;;  %v698_v21 = vpop.permute.xlu0 %697  ;;  %811 = vst [vmem:[%s1291_s29 + $0x8] sm:$0xff] %v795_v22 }
 0x1cf   : > { %v759_v19 = vmul.f32 %v698_v21, %v1327_v27 }
 0x1d0   : > { %v783_v23 = vadd.f32 %v1364_v2, %v760_v20 }
 0x1d1   : > { %v782_v24 = vadd.f32 %v1364_v2, %v759_v19  ;;  %v713_v25 = vpop.permute.xlu1 %712 }
 0x1d2   : > { %v799_v28 = vmax.f32 %v783_v23, 0.0  ;;  %v762_v29 = vmul.f32 %v713_v25, %v1331_v30  ;;  %v708_v32 = vpop.permute.xlu0 %707 }
 0x1d3   : > { %v798_v33 = vmax.f32 %v782_v24, 0.0  ;;  %v761_v26 = vmul.f32 %v708_v32, %v1333_v31 }
 0x1d4   : > { %815 = vst [vmem:[%s1291_s29 + $0x28] sm:$0xff] %v799_v28  ;;  %v785_v36 = vadd.f32 %v1364_v2, %v762_v29 }
 0x1d5   : > { %814 = vst [vmem:[%s1291_s29 + $0x20] sm:$0xff] %v798_v33  ;;  %v784_v27 = vadd.f32 %v1364_v2, %v761_v26  ;;  %v723_v37 = vpop.permute.xlu1 %722 }
 0x1d6   : > { %v801_v38 = vmax.f32 %v785_v36, 0.0  ;;  %v764_v39 = vmul.f32 %v723_v37, %v1337_v34  ;;  %v718_v41 = vpop.permute.xlu0 %717 }
 0x1d7   : > { %v800_v43 = vmax.f32 %v784_v27, 0.0  ;;  %v763_v30 = vmul.f32 %v718_v41, %v1339_v35 }
 0x1d8   : > { %817 = vst [vmem:[%s1291_s29 + $0x38] sm:$0xff] %v801_v38  ;;  %v787_v44 = vadd.f32 %v1364_v2, %v764_v39 }
 0x1d9   : > { %816 = vst [vmem:[%s1291_s29 + $0x30] sm:$0xff] %v800_v43  ;;  %v786_v31 = vadd.f32 %v1364_v2, %v763_v30  ;;  %v733_v45 = vpop.permute.xlu1 %732 }
 0x1da   : > { %v803_v47 = vmax.f32 %v787_v44, 0.0  ;;  %v766_v49 = vmul.f32 %v733_v45, %v1343_v40  ;;  %v728_v50 = vpop.permute.xlu0 %727 }
 0x1db   : > { %v802_v51 = vmax.f32 %v786_v31, 0.0  ;;  %v765_v34 = vmul.f32 %v728_v50, %v1345_v42 }
 0x1dc   : > { %819 = vst [vmem:[%s1291_s29 + $0x48] sm:$0xff] %v803_v47  ;;  %v789_v53 = vadd.f32 %v1364_v2, %v766_v49 }
 0x1dd   : > { %818 = vst [vmem:[%s1291_s29 + $0x40] sm:$0xff] %v802_v51  ;;  %v788_v35 = vadd.f32 %v1364_v2, %v765_v34  ;;  %v743_v55 = vpop.permute.xlu1 %742 }
 0x1de   : > { %v805_v56 = vmax.f32 %v789_v53, 0.0  ;;  %v768_v57 = vmul.f32 %v743_v55, %v1349_v46  ;;  %v738_v58 = vpop.permute.xlu0 %737 }
 0x1df   : > { %v804_v59 = vmax.f32 %v788_v35, 0.0  ;;  %v767_v40 = vmul.f32 %v738_v58, %v1351_v48 }
 0x1e0   : > { %821 = vst [vmem:[%s1291_s29 + $0x58] sm:$0xff] %v805_v56  ;;  %v791_v42 = vadd.f32 %v1364_v2, %v768_v57 }
 0x1e1   : > { %820 = vst [vmem:[%s1291_s29 + $0x50] sm:$0xff] %v804_v59  ;;  %v790_v60 = vadd.f32 %v1364_v2, %v767_v40  ;;  %v753_v61 = vpop.permute.xlu1 %752 }
 0x1e2   : > { %v807_v62 = vmax.f32 %v791_v42, 0.0  ;;  %v770_v63 = vmul.f32 %v753_v61, %v1355_v52  ;;  %v748_v0 = vpop.permute.xlu0 %747 }
 0x1e3   : > { %v806_v1 = vmax.f32 %v790_v60, 0.0  ;;  %v769_v46 = vmul.f32 %v748_v0, %v1357_v54 }
 0x1e4   : > { %823 = vst [vmem:[%s1291_s29 + $0x68] sm:$0xff] %v807_v62  ;;  %v793_v3 = vadd.f32 %v1364_v2, %v770_v63 }
 0x1e5   : > { %822 = vst [vmem:[%s1291_s29 + $0x60] sm:$0xff] %v806_v1  ;;  %v792_v48 = vadd.f32 %v1364_v2, %v769_v46 }
 0x1e6   : > { %v809_v4 = vmax.f32 %v793_v3, 0.0 }
 0x1e7   : > { %v808_v5 = vmax.f32 %v792_v48, 0.0 }
 0x1e8   : > { %825 = vst [vmem:[%s1291_s29 + $0x78] sm:$0xff] %v809_v4 }
 0x1e9   : > { %824 = vst [vmem:[%s1291_s29 + $0x70] sm:$0xff] %v808_v5 }
 0x1ea PF: > { %s13_s18 = sadd.s32 1, %s1176_s18   ;;  %s1439_s12 = smov %s1156_s13 }
 0x1eb   : > { %p10_p0 = scmp.ge.s32.totalorder %s13_s18, 6   ;;  %s1440_s13 = smov %s1251_s25 }
 0x1ec   : > { %s1441_s14 = smov %s1168_s16  ;;  %s1442_s15 = smov %s1172_s17 }
 0x1ed   : > { %s1443_s16 = smov %s1446_s19  ;;  %s1444_s17 = smov %s1450_s20 }
 0x1ee   :  { %12 = sbr.rel (!%p10_p0) target bundleno = 4 (0x4), region = 119 }

</bundles_post_ra>
